<compile_context>
chip_gen: v7x
topology: tpu7x:2x2x1
jax: 0.10.0
libtpu: 0.0.40
codegen_flags: <defaults>
</compile_context>

<pallas_src>
import functools
import math

import jax
import jax.numpy as jnp
from jax.experimental import pallas as pl
from jax.experimental.pallas import tpu as pltpu


def _round_up(x, m):
    return ((x + m - 1) // m) * m


# ----------------------------------------------------------------------------
# Kernel: one grid step == one RNN timestep.
# ----------------------------------------------------------------------------
def _rnn_seq_kernel(x_ref, h0_ref, w_ref, bias_ref, mask_ref, out_ref, state_ref,
                    *, mxu_dtype):
    """Refs (all VMEM):
      x_ref:    (1, Bp, K)  f32   lane-dense packed x_t: cols [0,I)=x, rest 0
      h0_ref:   (Bp, K)     f32   packed h0: cols [I,I+H)=h0, rest 0 (resident)
      w_ref:    (K, K)      mxu   fused weights (i2h|i2o), zero rows >= I+H (resident)
      bias_ref: (1, K)      f32   [0 | b_i2h | b_i2o | 0]                 (resident)
      mask_ref: (1, K)      f32   0 on logit cols [I+H, I+H+O), -inf else (resident)
      out_ref:  (1, Bp, K)  f32   per-step output slab
      state_ref:(Bp, K)     f32   persistent carry (scratch) = previous out slab
    """
    t = pl.program_id(0)

    @pl.when(t == 0)
    def _():
        state_ref[...] = h0_ref[...]

    # Combined slab [x_t | h_{t-1} | (stale, hits zero weight rows) | 0].
    combined = x_ref[0] + state_ref[...]                               # (Bp, K) f32

    # Single wide MXU matmul (i2h + i2o fused), f32 accumulation.
    fused = jnp.dot(combined.astype(mxu_dtype), w_ref[...],
                    preferred_element_type=jnp.float32)                # (Bp, K)
    fused = fused + bias_ref[...]                                      # f32 bias add

    # Numerically-stable log-softmax over the logit columns only
    # (mask is 0 there, -inf elsewhere; exp(-inf) = 0).
    masked = fused + mask_ref[...]
    m = jnp.max(masked, axis=-1, keepdims=True)
    shifted = masked - m
    lse = jnp.log(jnp.sum(jnp.exp(shifted), axis=-1, keepdims=True))
    logprobs = shifted - lse

    is_logit = mask_ref[...] == 0.0                                    # (1, K)
    val = jnp.where(is_logit, logprobs, fused)                         # (Bp, K)

    # Lane-dense, sublane-dense stores; the state update is the same full slab.
    out_ref[0] = val.astype(out_ref.dtype)
    state_ref[...] = val


# ----------------------------------------------------------------------------
# One-time parameter / input preprocessing (hoisted out of the time loop).
# ----------------------------------------------------------------------------
def prepare_params(w_i2h, b_i2h, w_i2o, b_i2o, input_size,
                   *, matmul_dtype=jnp.bfloat16):
    """w_i2h: (H, I+H), b_i2h: (H,), w_i2o: (O, I+H), b_i2o: (O,)  (torch layout)."""
    hidden_size = w_i2h.shape[0]
    output_size = w_i2o.shape[0]
    I, H, O = input_size, hidden_size, output_size
    C = I + H                          # live rows of the combined slab
    logit_start = I + H                # output layout: [0|new hidden|logits|0]
    k_pad = _round_up(max(C, logit_start + O), 128)

    # Square fused weight whose output columns mirror the combined-slab layout.
    w = jnp.zeros((k_pad, k_pad), jnp.float32)
    w = w.at[:C, I:I + H].set(w_i2h.T.astype(jnp.float32))
    w = w.at[:C, logit_start:logit_start + O].set(w_i2o.T.astype(jnp.float32))
    w = w.astype(matmul_dtype)

    bias = jnp.zeros((1, k_pad), jnp.float32)
    bias = bias.at[0, I:I + H].set(b_i2h.astype(jnp.float32))
    bias = bias.at[0, logit_start:logit_start + O].set(b_i2o.astype(jnp.float32))

    col = jnp.arange(k_pad)
    mask = jnp.where((col >= logit_start) & (col < logit_start + O),
                     0.0, -jnp.inf).astype(jnp.float32).reshape(1, k_pad)

    meta = dict(input_size=I, hidden_size=H, output_size=O,
                k_pad=k_pad, logit_start=logit_start)
    return w, bias, mask, meta


def pack_inputs(x_seq, meta, batch_pad):
    T, B, I = x_seq.shape
    K = meta["k_pad"]
    xp = jnp.zeros((T, batch_pad, K), jnp.float32)
    xp = xp.at[:, :B, :I].set(x_seq.astype(jnp.float32))
    return xp


def pack_hidden(h0, meta, batch_pad):
    B, H = h0.shape
    I, K = meta["input_size"], meta["k_pad"]
    hp = jnp.zeros((batch_pad, K), jnp.float32)
    hp = hp.at[:B, I:I + H].set(h0.astype(jnp.float32))
    return hp


# ----------------------------------------------------------------------------
# Wrappers.
# ----------------------------------------------------------------------------
def rnn_forward_sequence(x_seq, h0, w_full, bias, mask, meta):
    """Runs T chained RNN-cell steps (each step == module.forward).

    x_seq: (T, B, I), h0: (B, H).
    Returns (log_softmax outputs (T, B, O), final hidden (B, H))."""
    T, B, _ = x_seq.shape
    I, H, O, K = (meta["input_size"], meta["hidden_size"],
                  meta["output_size"], meta["k_pad"])
    Bp = _round_up(B, 8)

    xp = pack_inputs(x_seq, meta, Bp)
    hp = pack_hidden(h0, meta, Bp)

    kernel = functools.partial(_rnn_seq_kernel, mxu_dtype=w_full.dtype)

    itemsize = jnp.dtype(w_full.dtype).itemsize
    cost = pl.CostEstimate(
        flops=int(2 * T * Bp * K * K),
        transcendentals=int(T * Bp * (K + 1)),
        bytes_accessed=int(xp.size * 4 + w_full.size * itemsize
                           + hp.size * 4 + 2 * K * 4 + T * Bp * K * 4),
    )

    grid_spec = pltpu.PrefetchScalarGridSpec(
        num_scalar_prefetch=0,
        grid=(T,),
        in_specs=[
            pl.BlockSpec((1, Bp, K), lambda t: (t, 0, 0)),   # x_t (per-step DMA)
            pl.BlockSpec((Bp, K), lambda t: (0, 0)),         # h0   (resident)
            pl.BlockSpec((K, K), lambda t: (0, 0)),          # W    (resident)
            pl.BlockSpec((1, K), lambda t: (0, 0)),          # bias (resident)
            pl.BlockSpec((1, K), lambda t: (0, 0)),          # mask (resident)
        ],
        out_specs=pl.BlockSpec((1, Bp, K), lambda t: (t, 0, 0)),
        scratch_shapes=[pltpu.VMEM((Bp, K), jnp.float32)],   # hidden-state carry
    )

    out_slab = pl.pallas_call(
        kernel,
        out_shape=jax.ShapeDtypeStruct((T, Bp, K), jnp.float32),
        grid_spec=grid_spec,
        compiler_params=pltpu.CompilerParams(
            dimension_semantics=("arbitrary",)),
        cost_estimate=cost,
    )(xp, hp, w_full, bias, mask)

    ls = meta["logit_start"]
    outputs = out_slab[:, :B, ls:ls + O]
    final_hidden = out_slab[T - 1, :B, I:I + H]
    return outputs, final_hidden


def rnn_forward(inp, hidden, w_full, bias, mask, meta):
    """Single step — exactly the module's forward(input, hidden)."""
    out_seq, new_hidden = rnn_forward_sequence(inp[None], hidden,
                                               w_full, bias, mask, meta)
    return out_seq[0], new_hidden


# ----------------------------------------------------------------------------
# References.
# ----------------------------------------------------------------------------
def _reference_step(inp, hidden, w_i2h, b_i2h, w_i2o, b_i2o):
    # Note: like the PyTorch tutorial RNN (and unlike torch.nn.RNN), the hidden
    # update has NO nonlinearity — this matches the spec module exactly.
    combined = jnp.concatenate([inp, hidden], axis=1)
    new_hidden = combined @ w_i2h.T + b_i2h
    logits = combined @ w_i2o.T + b_i2o
    return jax.nn.log_softmax(logits, axis=1), new_hidden


def _reference_fused(xp, hp, w_full, bias, mask, meta, T, B):
    """Same math as the kernel (incl. the MXU-dtype cast), in plain jnp."""
    I, H, O, ls = (meta["input_size"], meta["hidden_size"],
                   meta["output_size"], meta["logit_start"])
    state = hp
    outs = []
    for t in range(T):
        combined = xp[t] + state
        fused = jnp.dot(combined.astype(w_full.dtype), w_full,
                        preferred_element_type=jnp.float32) + bias
        masked = fused + mask
        m = jnp.max(masked, axis=-1, keepdims=True)
        shifted = masked - m
        lse = jnp.log(jnp.sum(jnp.exp(shifted), axis=-1, keepdims=True))
        val = jnp.where(mask == 0.0, shifted - lse, fused)
        outs.append(val[:B, ls:ls + O])
        state = val
    return jnp.stack(outs), state[:B, I:I + H]


# ----------------------------------------------------------------------------
# Demo / self-check.
# ----------------------------------------------------------------------------
if __name__ == "__main__":
    T, B = 8, 2
    input_size, hidden_size, output_size = 16, 32, 8

    key = jax.random.PRNGKey(0)
    ks = jax.random.split(key, 6)
    x_seq = jax.random.normal(ks[0], (T, B, input_size), jnp.float32)
    h0 = jnp.zeros((B, hidden_size), jnp.float32)          # initHidden-like

    cin = input_size + hidden_size
    bound = 1.0 / math.sqrt(cin)
    w_i2h = jax.random.uniform(ks[1], (hidden_size, cin), jnp.float32, -bound, bound)
    b_i2h = jax.random.uniform(ks[2], (hidden_size,), jnp.float32, -bound, bound)
    w_i2o = jax.random.uniform(ks[3], (output_size, cin), jnp.float32, -bound, bound)
    b_i2o = jax.random.uniform(ks[4], (output_size,), jnp.float32, -bound, bound)

    # Torch-style f32 reference (repeated module.forward over the sequence).
    ref_outs, h_ref = [], h0
    for t in range(T):
        o, h_ref = _reference_step(x_seq[t], h_ref, w_i2h, b_i2h, w_i2o, b_i2o)
        ref_outs.append(o)
    ref_out = jnp.stack(ref_outs)

    # --- f32 MXU path: exact semantic check against the torch-style reference.
    w32, b32, m32, meta = prepare_params(w_i2h, b_i2h, w_i2o, b_i2o, input_size,
                                         matmul_dtype=jnp.float32)
    jax.block_until_ready((w32, b32, m32))
    out_f32, hid_f32 = rnn_forward_sequence(x_seq, h0, w32, b32, m32, meta)
    jax.block_until_ready((out_f32, hid_f32))
    assert jnp.allclose(out_f32, ref_out, atol=1e-5), "f32 sequence output mismatch"
    assert jnp.allclose(hid_f32, h_ref, atol=1e-5), "f32 final hidden mismatch"

    # --- single step == module.forward.
    out1, hid1 = rnn_forward(x_seq[0], h0, w32, b32, m32, meta)
    r1, rh1 = _reference_step(x_seq[0], h0, w_i2h, b_i2h, w_i2o, b_i2o)
    jax.block_until_ready((out1, hid1))
    assert jnp.allclose(out1, r1, atol=1e-5), "single-step output mismatch"
    assert jnp.allclose(hid1, rh1, atol=1e-5), "single-step hidden mismatch"

    # --- bf16 MXU path (full-rate MXU on v5e/v6e/v7x), f32 epilogue.
    wbf, bbf, mbf, metab = prepare_params(w_i2h, b_i2h, w_i2o, b_i2o, input_size,
                                          matmul_dtype=jnp.bfloat16)
    out_bf, hid_bf = rnn_forward_sequence(x_seq, h0, wbf, bbf, mbf, metab)
    jax.block_until_ready((out_bf, hid_bf))
    Bp = _round_up(B, 8)
    xp = pack_inputs(x_seq, metab, Bp)
    hp = pack_hidden(h0, metab, Bp)
    mref_out, mref_hid = _reference_fused(xp, hp, wbf, bbf, mbf, metab, T, B)
    assert jnp.allclose(out_bf, mref_out, atol=1e-4), "bf16 output mismatch (matched ref)"
    assert jnp.allclose(hid_bf, mref_hid, atol=1e-4), "bf16 hidden mismatch (matched ref)"
    # Loose sanity check against the f32 torch-style reference.
    assert jnp.allclose(out_bf, ref_out, atol=1e-1), "bf16 output far from f32 reference"

    print("KERNEL_OK")
</pallas_src>

<mosaic_0001>
module attributes {stable_mosaic.version = 11 : i64} {
  func.func @_rnn_seq_kernel(%arg0: i32, %arg1: memref<1x8x128xf32, #tpu.memory_space<vmem>>, %arg2: memref<8x128xf32, #tpu.memory_space<vmem>>, %arg3: memref<128x128xf32, #tpu.memory_space<vmem>>, %arg4: memref<1x128xf32, #tpu.memory_space<vmem>>, %arg5: memref<1x128xf32, #tpu.memory_space<vmem>>, %arg6: memref<1x8x128xf32, #tpu.memory_space<vmem>>, %arg7: memref<8x128xf32, #tpu.memory_space<vmem>>) attributes {dimension_semantics = [#tpu.dimension_semantics<arbitrary>], iteration_bounds = array<i64: 8>, scalar_prefetch = 0 : i64, scratch_operands = 1 : i64, tpu.core_type = #tpu.core_type<tc>, window_params = [{transform_indices = @transform_0, window_bounds = array<i64: 1, 8, 128>}, {pipeline_mode = #tpu.pipeline_mode<synchronous>, transform_indices = @transform_1, window_bounds = array<i64: 8, 128>}, {pipeline_mode = #tpu.pipeline_mode<synchronous>, transform_indices = @transform_2, window_bounds = array<i64: 128, 128>}, {pipeline_mode = #tpu.pipeline_mode<synchronous>, transform_indices = @transform_3, window_bounds = array<i64: 1, 128>}, {pipeline_mode = #tpu.pipeline_mode<synchronous>, transform_indices = @transform_4, window_bounds = array<i64: 1, 128>}, {transform_indices = @transform_5, window_bounds = array<i64: 1, 8, 128>}]} {
    %c0_i32 = arith.constant 0 : i32
    %0 = arith.cmpi eq, %arg0, %c0_i32 : i32
    %1 = arith.extui %0 : i1 to i32
    %c0_i32_0 = arith.constant 0 : i32
    %2 = arith.cmpi ne, %1, %c0_i32_0 : i32
    scf.if %2 {
      %c0_21 = arith.constant 0 : index
      %c0_22 = arith.constant 0 : index
      %35 = vector.load %arg2[%c0_21, %c0_22] : memref<8x128xf32, #tpu.memory_space<vmem>>, vector<8x128xf32>
      %c0_23 = arith.constant 0 : index
      %c0_24 = arith.constant 0 : index
      %36 = vector.load %arg7[%c0_23, %c0_24] : memref<8x128xf32, #tpu.memory_space<vmem>>, vector<8x128xf32>
      tpu.vector_store %arg7[%c0_23, %c0_24], %35 {strides = array<i32>} : memref<8x128xf32, #tpu.memory_space<vmem>>, vector<8x128xf32>,
    } else {
    }
    %c0 = arith.constant 0 : index
    %c0_1 = arith.constant 0 : index
    %c0_2 = arith.constant 0 : index
    %3 = vector.load %arg1[%c0, %c0_1, %c0_2] : memref<1x8x128xf32, #tpu.memory_space<vmem>>, vector<1x8x128xf32>
    %4 = vector.shape_cast %3 : vector<1x8x128xf32> to vector<8x128xf32>
    %c0_3 = arith.constant 0 : index
    %c0_4 = arith.constant 0 : index
    %5 = vector.load %arg7[%c0_3, %c0_4] : memref<8x128xf32, #tpu.memory_space<vmem>>, vector<8x128xf32>
    %6 = arith.addf %4, %5 : vector<8x128xf32>
    %c0_5 = arith.constant 0 : index
    %c0_6 = arith.constant 0 : index
    %7 = vector.load %arg3[%c0_5, %c0_6] : memref<128x128xf32, #tpu.memory_space<vmem>>, vector<128x128xf32>
    %cst = arith.constant dense<0.000000e+00> : vector<8x128xf32>
    %8 = tpu.matmul %6, %7, %cst {dimension_numbers = #tpu.dot_dimension_numbers<[1], [0], [0], [1], [0, 0, 1, 1], [], []>} : vector<8x128xf32>, vector<128x128xf32>, vector<8x128xf32> -> vector<8x128xf32>
    %c0_7 = arith.constant 0 : index
    %c0_8 = arith.constant 0 : index
    %9 = vector.load %arg4[%c0_7, %c0_8] : memref<1x128xf32, #tpu.memory_space<vmem>>, vector<1x128xf32>
    %10 = vector.broadcast %9 : vector<1x128xf32> to vector<8x128xf32>
    %11 = arith.addf %8, %10 : vector<8x128xf32>
    %c0_9 = arith.constant 0 : index
    %c0_10 = arith.constant 0 : index
    %12 = vector.load %arg5[%c0_9, %c0_10] : memref<1x128xf32, #tpu.memory_space<vmem>>, vector<1x128xf32>
    %13 = vector.broadcast %12 : vector<1x128xf32> to vector<8x128xf32>
    %14 = arith.addf %11, %13 : vector<8x128xf32>
    %cst_11 = arith.constant dense<0xFF800000> : vector<8xf32>
    %15 = vector.multi_reduction <maximumf>, %14, %cst_11 [1] : vector<8x128xf32> to vector<8xf32>
    %16 = vector.shape_cast %15 : vector<8xf32> to vector<8x1xf32>
    %17 = vector.broadcast %16 : vector<8x1xf32> to vector<8x128xf32>
    %18 = arith.subf %14, %17 : vector<8x128xf32>
    %19 = math.exp %18 : vector<8x128xf32>
    %cst_12 = arith.constant dense<0.000000e+00> : vector<8xf32>
    %20 = vector.multi_reduction <add>, %19, %cst_12 [1] : vector<8x128xf32> to vector<8xf32>
    %21 = vector.shape_cast %20 : vector<8xf32> to vector<8x1xf32>
    %22 = math.log %21 : vector<8x1xf32>
    %23 = vector.broadcast %22 : vector<8x1xf32> to vector<8x128xf32>
    %24 = arith.subf %18, %23 : vector<8x128xf32>
    %c0_13 = arith.constant 0 : index
    %c0_14 = arith.constant 0 : index
    %25 = vector.load %arg5[%c0_13, %c0_14] : memref<1x128xf32, #tpu.memory_space<vmem>>, vector<1x128xf32>
    %cst_15 = arith.constant 0.000000e+00 : f32
    %26 = vector.broadcast %cst_15 : f32 to vector<1x128xf32>
    %27 = arith.cmpf oeq, %25, %26 : vector<1x128xf32>
    %28 = vector.shape_cast %27 : vector<1x128xi1> to vector<1x128xi1>
    %29 = vector.broadcast %28 : vector<1x128xi1> to vector<8x128xi1>
    %30 = arith.select %29, %24, %11 : vector<8x128xi1>, vector<8x128xf32>
    %c0_16 = arith.constant 0 : index
    %c0_17 = arith.constant 0 : index
    %c0_18 = arith.constant 0 : index
    %31 = vector.load %arg6[%c0_16, %c0_17, %c0_18] : memref<1x8x128xf32, #tpu.memory_space<vmem>>, vector<1x8x128xf32>
    %32 = vector.shape_cast %31 : vector<1x8x128xf32> to vector<8x128xf32>
    %33 = vector.shape_cast %30 : vector<8x128xf32> to vector<1x8x128xf32>
    tpu.vector_store %arg6[%c0_16, %c0_17, %c0_18], %33 {strides = array<i32>} : memref<1x8x128xf32, #tpu.memory_space<vmem>>, vector<1x8x128xf32>,
    %c0_19 = arith.constant 0 : index
    %c0_20 = arith.constant 0 : index
    %34 = vector.load %arg7[%c0_19, %c0_20] : memref<8x128xf32, #tpu.memory_space<vmem>>, vector<8x128xf32>
    tpu.vector_store %arg7[%c0_19, %c0_20], %30 {strides = array<i32>} : memref<8x128xf32, #tpu.memory_space<vmem>>, vector<8x128xf32>,
    return
  }
  func.func @transform_0(%arg0: i32) -> (i32, i32, i32) {
    %c0_i32 = arith.constant 0 : i32
    %c0_i32_0 = arith.constant 0 : i32
    %c0_i32_1 = arith.constant 0 : i32
    return %arg0, %c0_i32, %c0_i32_0 : i32, i32, i32
  }
  func.func @transform_1(%arg0: i32) -> (i32, i32) {
    %c0_i32 = arith.constant 0 : i32
    %c0_i32_0 = arith.constant 0 : i32
    %c0_i32_1 = arith.constant 0 : i32
    return %c0_i32, %c0_i32_0 : i32, i32
  }
  func.func @transform_2(%arg0: i32) -> (i32, i32) {
    %c0_i32 = arith.constant 0 : i32
    %c0_i32_0 = arith.constant 0 : i32
    %c0_i32_1 = arith.constant 0 : i32
    return %c0_i32, %c0_i32_0 : i32, i32
  }
  func.func @transform_3(%arg0: i32) -> (i32, i32) {
    %c0_i32 = arith.constant 0 : i32
    %c0_i32_0 = arith.constant 0 : i32
    %c0_i32_1 = arith.constant 0 : i32
    return %c0_i32, %c0_i32_0 : i32, i32
  }
  func.func @transform_4(%arg0: i32) -> (i32, i32) {
    %c0_i32 = arith.constant 0 : i32
    %c0_i32_0 = arith.constant 0 : i32
    %c0_i32_1 = arith.constant 0 : i32
    return %c0_i32, %c0_i32_0 : i32, i32
  }
  func.func @transform_5(%arg0: i32) -> (i32, i32, i32) {
    %c0_i32 = arith.constant 0 : i32
    %c0_i32_0 = arith.constant 0 : i32
    %c0_i32_1 = arith.constant 0 : i32
    return %arg0, %c0_i32, %c0_i32_0 : i32, i32, i32
  }
}

</mosaic_0001>

<bundles_post_ra>
// kernel: tpu_custom_call.1
= control target key start
LH: loop header
LB: loop body
LE: loop exit
PB: predicated region body
PF: predicated region fallthrough
CT: control target
= control target key end

     0   :  { %10 = vsyncpa [#allocation4], 0  ;;  %s1105_s0 = inlined_call_operand.hbm [shape: f32[8,8,128], index: 0, kind: input, shape index: {}]   ;;  %s1106_s1 = inlined_call_operand.hbm [shape: f32[8,128], index: 1, kind: input, shape index: {}]   ;;  %s1107_s2 = inlined_call_operand.hbm [shape: f32[128,128], index: 2, kind: input, shape index: {}]   ;;  %s1108_s3 = inlined_call_operand.vmem [shape: f32[1,128], index: 3, kind: input, shape index: {}]   ;;  %s1109_s4 = inlined_call_operand.vmem [shape: f32[1,128], index: 4, kind: input, shape index: {}]   ;;  %s1110_s5 = inlined_call_operand.hbm [shape: f32[8,8,128], index: 5, kind: output, shape index: {}]  }
   0x1   :  { %12 = vsyncpa [#allocation4 + $0x1], 0 }
   0x2   :  { %13 = vsyncpa [#allocation7], 0 }
   0x3   :  { %14 = vsyncpa [#allocation5], 0 }
   0x4   :  { %16 = vsyncpa [#allocation5 + $0x1], 0  ;;  %s869_s18 = smov 0   ;;  %s871_s19 = smov 0  }
   0x5   :  { %s873_s20 = smov 0   ;;  %s875_s21 = smov 0  }
   0x6 LB: > { %s890_s22 = sadd.s32 4294967295, %s827_s21   ;;  %s500_s23 = sadd.s32 4294967294, %s827_s21   ;;  %s827_s21 = sphi %s875_s21, %s1130_s21   ;;  %s823_s20 = sphi %s873_s20, %s1129_s20   ;;  %s819_s19 = sphi %s871_s19, %s1128_s19   ;;  %s815_s18 = sphi %s869_s18, %s1127_s18  }
   0x7   : > { %p42_p0 = scmp.ne.s32.totalorder %s819_s19, %s815_s18  ;;  %p1111_p1 = scmp.eq.s32.totalorder %s890_s22, 0 }
   0x8   : > { %p156_p3 = scmp.eq.s32.totalorder %s500_s23, 7  ;;  %p501_p5 = scmp.ge.s32.totalorder %s827_s21, 1 }
   0x9   : > { %p899_p4 = por %p1111_p1, %p42_p0  ;;  %p163_p7 = scmp.lt.s32.totalorder %s827_s21, 9 }
   0xa   : > { %p904_p6 = por %p156_p3, %p42_p0  ;;  %s829_s27 = smov [#allocation6]  }
   0xb   : > { %s1114_s24 = scalar_select %p899_p4, 1, 0 }
   0xc   : > { %s1115_s25 = scalar_select %p904_p6, 1, 0 }
   0xd   : > { %p910_p9 = pnand %p501_p5, %p163_p7  ;;  %s176_s28 = sshll.u32 %s829_s27, 4  ;;  %s177_s28 = int_to_ptr.vmem [resolvable:$true] %s176_s28 }
   0xe   : > { %s830_s29 = smov [#allocation8]   ;;  %s671_s9 = scalar_lea.hbm %s1106_s1, 128 }
   0xf   : > { %s1116_s26 = scalar_select %p910_p9, 1, 0 }
  0x10   : > { %p606_p10 = pneg %p910_p9  ;;  %s186_s30 = sshll.u32 %s830_s29, 4  ;;  %s922_s30 = int_to_ptr.vmem [resolvable:$true] %s186_s30 }
  0x11   : > { %p672_p12 = scmp.ne.s32.totalorder %s1106_s1, %s671_s9  ;;  %p678_p5 = scmp.lt.u32.totalorder %s671_s9, %s1106_s1 }
  0x12   : > { %p918_p11 = pnand %p606_p10, %p1111_p1 }
  0x14   : > { %p673_p13 = pneg %p918_p11 }
  0x16   : > { %p674_p0 = pnand %p673_p13, %p672_p12 }
  0x18   : > { %p675_p3 = pneg %p674_p0 }
  0x1a   : > { %p680_p7 = pnand %p678_p5, %p675_p3 }
  0x1c   : > { %683 = shalt.err (!%p680_p7)
}
  0x1d   : > { %s684_s14 = scalar_lea.vmem %s177_s28, 128  ;;  %p692_p2 = scmp.lt.s32.totalorder %s177_s28, %s177_s28 }
  0x1e   : > { %p685_p10 = scmp.ne.s32.totalorder %s177_s28, %s684_s14  ;;  %p693_p6 = scmp.lt.s32.totalorder %s684_s14, %s684_s14 }
  0x20   : > { %p687_p8 = pnand %p685_p10, %p673_p13  ;;  %p694_p4 = por %p693_p6, %p692_p2 }
  0x22   : > { %p688_p1 = pneg %p687_p8 }
  0x24   : > { %p695_p9 = pnand %p694_p4, %p688_p1 }
  0x26   : > { %698 = shalt.err (!%p695_p9)
}
  0x27   : > { %609 = dma.hbm_to_vmem [thread:$0]  (!%p918_p11), %s1106_s1, 128, %s177_s28, [#allocation7]  }
  0x28   : > { %s699_s27 = scalar_lea.hbm %s1107_s2, 2048 }
  0x29   : > { %p700_p8 = scmp.ne.s32.totalorder %s1107_s2, %s699_s27  ;;  %p706_p4 = scmp.lt.u32.totalorder %s699_s27, %s1107_s2 }
  0x2b   : > { %p702_p2 = pnand %p700_p8, %p673_p13 }
  0x2d   : > { %p703_p1 = pneg %p702_p2 }
  0x2f   : > { %p708_p6 = pnand %p706_p4, %p703_p1 }
  0x31   : > { %711 = shalt.err (!%p708_p6)
}
  0x32   : > { %s712_s28 = scalar_lea.vmem %s922_s30, 2048  ;;  %p720_p3 = scmp.lt.s32.totalorder %s922_s30, %s922_s30 }
  0x33   : > { %p713_p9 = scmp.ne.s32.totalorder %s922_s30, %s712_s28  ;;  %p721_p5 = scmp.lt.s32.totalorder %s712_s28, %s712_s28 }
  0x35   : > { %p715_p12 = pnand %p713_p9, %p673_p13  ;;  %p722_p7 = por %p721_p5, %p720_p3 }
  0x37   : > { %p716_p0 = pneg %p715_p12 }
  0x39   : > { %p723_p10 = pnand %p722_p7, %p716_p0 }
  0x3b   : > { %726 = shalt.err (!%p723_p10)
}
  0x3c   : > { %s831_s10 = smov 128   ;;  %s832_s11 = smov 8  }
  0x3d   : > { %612 = dma.hbm_to_vmem [thread:$0]  (!%p918_p11), %s1107_s2, 2048, %s922_s30, [#allocation7], %s831_s10, %s831_s10, %s832_s11  }
  0x3e   : > { %s972_s14 = sadd.s32 1, %s827_s21   ;;  %s29_s15 = sadd.s32 1, %s823_s20 }
  0x3f   : > { %s26_s16 = ssub.s32 %s827_s21, %s972_s14  ;;  %p36_p13 = scmp.ne.s32.totalorder %s823_s20, %s819_s19 }
  0x40   : > { %p27_p8 = scmp.eq.s32.totalorder %s26_s16, 0  ;;  %p37_p2 = scmp.eq.s32.totalorder %s827_s21, 0 }
  0x41   : > { %p1118_p1 = scmp.eq.s32.totalorder %s890_s22, 7  ;;  %p623_p6 = scmp.lt.s32.totalorder %s827_s21, 8 }
  0x42   : > { %s988_s23 = scalar_select %p27_p8, %s823_s20, %s29_s15  }
  0x43   : > { %p982_p4 = por %p1118_p1, %p36_p13  ;;  %p38_p9 = por %p37_p2, %p36_p13 }
  0x44   : > { %s206_s6 = sand.u32 1, %s823_s20   ;;  %s506_s30 = sshll.u32 %s827_s21, 7 }
  0x45   : > { %s505_s27 = sshll.u32 %s206_s6, 3  ;;  %s995_s8 = scalar_lea.hbm %s1105_s0, %s506_s30 }
  0x46   : > { %s210_s9 = scalar_lea.vmem [#allocation3], %s505_s27  ;;  %p999_p11 = pnand %p623_p6, %p38_p9 }
  0x47   : > { %s217_s28 = sshll.u32 %s210_s9, 4  ;;  %s207_s11 = scalar_lea.sflag [#allocation4], %s206_s6  ;;  %s997_s28 = int_to_ptr.vmem [resolvable:$true] %s217_s28 }
  0x48   : > { %s727_s12 = scalar_lea.hbm %s995_s8, 128  ;;  %p729_p0 = pneg %p999_p11 }
  0x49   : > { %p728_p12 = scmp.ne.s32.totalorder %s995_s8, %s727_s12  ;;  %s732_s16 = scalar_lea.hbm %s1105_s0, 1024 }
  0x4a   : > { %p733_p7 = scmp.lt.u32.totalorder %s995_s8, %s1105_s0  ;;  %p734_p10 = scmp.lt.u32.totalorder %s732_s16, %s727_s12 }
  0x4b   : > { %p730_p3 = pnand %p729_p0, %p728_p12  ;;  %p736_p8 = scmp.lt.u32.totalorder %s727_s12, %s995_s8 }
  0x4c   : > { %p735_p13 = por %p734_p10, %p733_p7 }
  0x4d   : > { %p731_p5 = pneg %p730_p3 }
  0x4e   : > { %p737_p2 = por %p736_p8, %p735_p13 }
  0x50   : > { %p738_p1 = pnand %p737_p2, %p731_p5 }
  0x52   : > { %741 = shalt.err (!%p738_p1)
}
  0x53   : > { %s742_s6 = scalar_lea.vmem %s997_s28, 128  ;;  %s833_s29 = smov [#allocation3]  }
  0x54   : > { %p743_p6 = scmp.ne.s32.totalorder %s997_s28, %s742_s6  ;;  %s747_s7 = sshll.u32 %s833_s29, 4  ;;  %s748_s7 = int_to_ptr.vmem [resolvable:$false] %s747_s7 }
  0x55   : > { %s749_s9 = scalar_lea.vmem %s748_s7, 256  ;;  %p750_p3 = scmp.lt.s32.totalorder %s997_s28, %s748_s7 }
  0x56   : > { %p745_p9 = pnand %p743_p6, %p729_p0  ;;  %p751_p7 = scmp.lt.s32.totalorder %s749_s9, %s742_s6 }
  0x58   : > { %p746_p12 = pneg %p745_p9  ;;  %p752_p10 = por %p751_p7, %p750_p3 }
  0x5a   : > { %p753_p13 = pnand %p752_p10, %p746_p12 }
  0x5c   : > { %756 = shalt.err (!%p753_p13)
}
  0x5d   : > { %616 = dma.hbm_to_vmem [thread:$0]  (!%p999_p11), %s995_s8, 128, %s997_s28, %s207_s11  }
  0x5e   : > { %p1121_p5 = scmp.ne.s32.totalorder %s1116_s26, 0 }
  0x5f   : > { %s1031_s12 = sand.u32 (!%p1121_p5), 1, %s819_s19   ;;  %p1122_p0 = scmp.ne.s32.totalorder (!%p1121_p5), %s1114_s24, 0 }
  0x60   : > { %226 = sbr.rel (%p1121_p5) target bundleno = 695 (0x2b7), region = 40  ;;  %s508_s13 = sshll.u32 (!%p1121_p5), %s1031_s12, 3 }
  0x61   : > { %s229_s15 = scalar_lea.sflag (!%p1121_p5), [#allocation4], %s1031_s12  ;;  %s1035_s16 = scalar_lea.vmem (!%p1121_p5), [#allocation3], %s508_s13 }
  0x67   : > { %802 = dma.done.wait (%p1122_p0), %s229_s15, 128  }
  0x68   : > { %804 = vsyncadd (%p1122_p0), %s229_s15, 4294967168  ;;  %p1123_p11 = scmp.eq.s32.totalorder %s890_s22, 0 }
  0x6a   : > { %806 = dma.done.wait (%p1123_p11), [#allocation7], 2176   ;;  %p1124_p8 = pmov %p1123_p11 }
  0x6b   : > { %s1045_s26 = scalar_lea.vmem [#allocation9], %s508_s13  ;;  %p1125_p2 = scmp.ne.s32.totalorder %s890_s22, 0 }
  0x6c   : > { %808 = vsyncadd (%p1124_p8), [#allocation7], 4294965120  ;;  %v271_v0 = vld [vmem:[#allocation6] sm:$0xff] (!%p1125_p2) }
  0x6d   : > { %270 = sbr.rel (%p1125_p2) target bundleno = 116 (0x74), region = 56  ;;  %272 = vst [vmem:[#allocation2] sm:$0xff] (!%p1125_p2), %v271_v0 }
  0x74 PF: > { %v276_v1 = vld [vmem:[#allocation8] sm:$0xff]  ;;  %v277_v2 = vld [vmem:[#allocation8 + $0x8] sm:$0xff]  ;;  %v278_v3 = vld [vmem:[#allocation8 + $0x10] sm:$0xff]  ;;  %v834_v4 = vmov 0.0|0.0   ;;  %vm835_vm0 = vmmov 0   ;;  %v836_v7 = vmov 0.0   ;;  %v371_v30 = vlaneseq }
  0x75   : > { %570 = vmatprep.subr.bf16.mxu0 %v834_v4  ;;  %v571_v5 = vpack.c.bf16 %v277_v2, %v276_v1  ;;  %v279_v6 = vld [vmem:[#allocation8 + $0x18] sm:$0xff]  ;;  %567 = vmatprep.mubr.msk.f32.mxu0 %vm835_vm0, %v836_v7  ;;  %v280_v9 = vld [vmem:[#allocation8 + $0x20] sm:$0xff]  ;;  %v281_v10 = vld [vmem:[#allocation8 + $0x28] sm:$0xff]  ;;  %v837_v45 = vmov 0   ;;  %s515_s11 = sshll.u32 %s890_s22, 7  ;;  %s411_s27 = sshll.u32 %s1045_s26, 4  ;;  %s1063_s27 = int_to_ptr.vmem [resolvable:$true] %s411_s27 }
  0x76   : > { %v574_v8 = vpack.c.bf16 %v279_v6, %v278_v3  ;;  %v577_v11 = vpack.c.bf16 %v281_v10, %v280_v9  ;;  %v282_v12 = vld [vmem:[#allocation8 + $0x30] sm:$0xff]  ;;  %v283_v13 = vld [vmem:[#allocation8 + $0x38] sm:$0xff]  ;;  %v284_v15 = vld [vmem:[#allocation8 + $0x40] sm:$0xff]  ;;  %v372_v31 = vshrl.u32 %v371_v30, 7  ;;  %s1061_s29 = scalar_lea.hbm %s1110_s5, %s515_s11  ;;  %s398_s7 = scalar_lea.sflag [#allocation5], %s1031_s12 }
  0x77   : > { %572 = vmatpush3.bf16.msra.mxu0 %v571_v5  ;;  %v580_v14 = vpack.c.bf16 %v283_v13, %v282_v12  ;;  %v285_v16 = vld [vmem:[#allocation8 + $0x48] sm:$0xff]  ;;  %v286_v18 = vld [vmem:[#allocation8 + $0x50] sm:$0xff]  ;;  %v287_v19 = vld [vmem:[#allocation8 + $0x58] sm:$0xff]  ;;  %s757_s9 = scalar_lea.vmem %s1063_s27, 128  ;;  %s838_s22 = smov [#allocation9]  }
  0x78   : > { %573 = vmatprep.subr.bf16.mxu0 %v834_v4  ;;  %v583_v17 = vpack.c.bf16 %v285_v16, %v284_v15  ;;  %v586_v20 = vpack.c.bf16 %v287_v19, %v286_v18  ;;  %v288_v21 = vld [vmem:[#allocation8 + $0x60] sm:$0xff]  ;;  %v289_v22 = vld [vmem:[#allocation8 + $0x68] sm:$0xff]  ;;  %v290_v24 = vld [vmem:[#allocation8 + $0x70] sm:$0xff]  ;;  %v373_v32 = vsub.s32 0, %v372_v31  ;;  %p758_p1 = scmp.ne.s32.totalorder %s1063_s27, %s757_s9  ;;  %s761_s13 = sshll.u32 %s838_s22, 4  ;;  %s762_s13 = int_to_ptr.vmem [resolvable:$false] %s761_s13 }
  0x79   : > { %v589_v23 = vpack.c.bf16 %v289_v22, %v288_v21  ;;  %v291_v25 = vld [vmem:[#allocation8 + $0x78] sm:$0xff]  ;;  %v273_v27 = vld [vmem:[%s1035_s16] sm:$0xff]  ;;  %v274_v28 = vld [vmem:[#allocation2] sm:$0xff]  ;;  %s763_s15 = scalar_lea.vmem %s762_s13, 256  ;;  %p764_p12 = scmp.lt.s32.totalorder %s1063_s27, %s762_s13 }
  0x7a   : > { %v592_v26 = vpack.c.bf16 %v291_v25, %v290_v24  ;;  %v275_v29 = vadd.f32 %v274_v28, %v273_v27  ;;  %v369_v33 = vld [vmem:[%s1109_s4] sm:$0x1]  ;;  %p759_p6 = pnand %p758_p1, %p982_p4  ;;  %p765_p3 = scmp.lt.s32.totalorder %s763_s15, %s757_s9 }
  0x7b   : > { %575 = vmatpush3.bf16.msra.mxu0 %v574_v8  ;;  %v513_v34 = vld [vmem:[%s1108_s3] ss:$0 sm:$0xff]  ;;  %v374_v35 = vrot.slane %v369_v33, %v373_v32  ;;  %vm387_vm1 = vcmp.eq.f32.partialorder %v369_v33, 0.0 }
  0x7c   : > { %576 = vmatprep.subr.bf16.mxu0 %v834_v4  ;;  %v388_v46 = vsel %vm387_vm1, 1, %v837_v45  ;;  %p760_p9 = pneg %p759_p6  ;;  %p766_p7 = por %p765_p3, %p764_p12 }
  0x7d   : > { %v392_v47 = vrot.slane %v388_v46, %v373_v32 }
  0x7e   : > { %p767_p10 = pnand %p766_p7, %p760_p9 }
  0x7f   : > { %578 = vmatpush3.bf16.msra.mxu0 %v577_v11  ;;  %vm393_vm2 = vcmp.eq.s32.totalorder %v392_v47, 1 }
  0x80   : > { %579 = vmatprep.subr.bf16.mxu0 %v834_v4 }
  0x83   : > { %581 = vmatpush3.bf16.msra.mxu0 %v580_v14 }
  0x84   : > { %582 = vmatprep.subr.bf16.mxu0 %v834_v4 }
  0x87   : > { %584 = vmatpush3.bf16.msra.mxu0 %v583_v17 }
  0x88   : > { %585 = vmatprep.subr.bf16.mxu0 %v834_v4 }
  0x8b   : > { %587 = vmatpush3.bf16.msra.mxu0 %v586_v20 }
  0x8c   : > { %588 = vmatprep.subr.bf16.mxu0 %v834_v4 }
  0x8f   : > { %590 = vmatpush3.bf16.msra.mxu0 %v589_v23 }
  0x90   : > { %591 = vmatprep.subr.bf16.mxu0 %v834_v4 }
  0x93   : > { %593 = vmatpush3.bf16.msra.mxu0 %v592_v26 }
  0x96   : > { %568 = vmatmul.mubr.f32.vlgmr.msra.gmra.mrb[0].mxu0 %v275_v29 }
 0x169   : > { %v365_v36 = vpop.f32.mrb[0].mxu0 }
 0x16a   : > { %v366_v37 = vadd.f32 %v513_v34, %v365_v36  ;;  %v569_v38 = vpop.f32.mrb[1].mxu0 }
 0x16c   : > { %v376_v39 = vadd.f32 %v374_v35, %v366_v37 }
 0x16e   : > { %377 = vmax.xlane.f32.xlu0 %v376_v39 }
 0x1fb   : > { %v378_v40 = vpop.xlane.xlu0 %377 }
 0x1fc   : > { %v379_v41 = vsub.f32 %v376_v39, %v378_v40 }
 0x1fe   : > { %v380_v42 = vmul.f32 1.442695, %v379_v41 }
 0x200   : > { %667 = vpow2.f32 %v380_v42 }
 0x20a   : > { %v668_v43 = vpop.eup %667 }
 0x20b   : > { %382 = vadd.xlane.f32.xlu0 %v668_v43 }
 0x298   : > { %v383_v44 = vpop.xlane.xlu0 %382 }
 0x299   : > { %669 = vlog2.f32 %v383_v44 }
 0x2a3   : > { %v670_v48 = vpop.eup %669 }
 0x2a4   : > { %v385_v49 = vmul.f32 0.6931472, %v670_v48 }
 0x2a6   : > { %v386_v50 = vsub.f32 %v379_v41, %v385_v49 }
 0x2a8   : > { %v394_v51 = vsel %vm393_vm2, %v386_v50, %v366_v37 }
 0x2a9   : > { %395 = vst [vmem:[%s1045_s26] sm:$0xff] %v394_v51  ;;  %396 = vst [vmem:[#allocation2] sm:$0xff] %v394_v51 }
 0x2aa   : > { %770 = shalt.err (!%p767_p10)
}
 0x2ab   : > { %s771_s12 = scalar_lea.hbm %s1061_s29, 128  ;;  %s775_s24 = scalar_lea.hbm %s1110_s5, 1024 }
 0x2ac   : > { %p772_p13 = scmp.ne.s32.totalorder %s1061_s29, %s771_s12  ;;  %p776_p11 = scmp.lt.u32.totalorder %s1061_s29, %s1110_s5 }
 0x2ad   : > { %p777_p8 = scmp.lt.u32.totalorder %s775_s24, %s771_s12  ;;  %p779_p1 = scmp.lt.u32.totalorder %s771_s12, %s1061_s29 }
 0x2ae   : > { %p773_p5 = pnand %p772_p13, %p982_p4 }
 0x2af   : > { %p778_p2 = por %p777_p8, %p776_p11 }
 0x2b0   : > { %p774_p0 = pneg %p773_p5 }
 0x2b1   : > { %p780_p6 = por %p779_p1, %p778_p2 }
 0x2b3   : > { %p781_p9 = pnand %p780_p6, %p774_p0 }
 0x2b5   : > { %784 = shalt.err (!%p781_p9)
}
 0x2b6   : > { %604 = dma.vmem_to_hbm [thread:$0]  (%p982_p4), %s1063_s27, 128, %s1061_s29, %s398_s7  }
 0x2b7 PF: > { %p626_p12 = scmp.ge.s32.totalorder %s827_s21, 2  ;;  %s423_s10 = sand.u32 1, %s815_s18  }
 0x2b8   : > { %p1126_p3 = scmp.ne.s32.totalorder %s1115_s25, 0  ;;  %s424_s11 = scalar_lea.sflag [#allocation5], %s423_s10 }
 0x2ba   : > { %p618_p7 = pnand %p626_p12, %p1126_p3 }
 0x2bc   : > { %810 = dma.done.wait (!%p618_p7), %s424_s11, 128  }
 0x2bd   : > { %812 = vsyncadd (!%p618_p7), %s424_s11, 4294967168  ;;  %p19_p10 = scmp.ge.s32.totalorder %s972_s14, 10   ;;  %s1127_s18 = smov %s819_s19 }
 0x2be   : > { %s1128_s19 = smov %s823_s20  ;;  %s1129_s20 = smov %s988_s23 }
 0x2bf   : > { %s1130_s21 = smov %s972_s14  ;;  %21 = sbr.rel (!%p19_p10) target bundleno = 6 (0x6), region = 97 }
 0x2c6   :  { %429 = vsyncpa [#allocation4], 1 }
 0x2c7   :  { %431 = vsyncpa [#allocation4 + $0x1], 1 }
 0x2c8   :  { %432 = vsyncpa [#allocation7], 1 }
 0x2c9   :  { %433 = vsyncpa [#allocation5], 1 }
 0x2ca   :  { %435 = vsyncpa [#allocation5 + $0x1], 1 }

</bundles_post_ra>
